<compile_context>
chip_gen: v7x
topology: tpu7x:2x2x1
jax: 0.10.0
libtpu: 0.0.40
codegen_flags: <defaults>
</compile_context>

<pallas_src>
import functools

import jax
import jax.numpy as jnp
from jax.experimental import pallas as pl
from jax.experimental.pallas import tpu as pltpu


def _round_up(v, m):
    return ((v + m - 1) // m) * m


@functools.lru_cache(maxsize=None)
def _vmem_limit_bytes():
    """Generation-specific scoped VMEM budget."""
    try:
        if hasattr(pltpu, "get_tpu_info"):
            cap = int(getattr(pltpu.get_tpu_info(), "vmem_capacity_bytes", 0) or 0)
            if cap >= 100 * 1024 * 1024:          # v5e / v6e: 128 MiB physical
                return 100 * 1024 * 1024
    except Exception:
        pass
    return 48 * 1024 * 1024                       # v7x (64 MiB / TC) or unknown


_BATCH_FOLD_BUDGET = 4 * 1024 * 1024              # fold batch below this


def _pick_nb(n, per_batch_bytes):
    """Fold the whole batch into one grid step when the working set is small
    (small-spatial layers): gives the MXU M = batch*H*W instead of H*W."""
    if n * per_batch_bytes <= _BATCH_FOLD_BUDGET:
        return n
    return 1


# ----------------------------------------------------------------------------
# pallas_call plumbing: grid over batch groups ("parallel" -> megacore),
# whole-feature-map blocks per step, weights resident across steps.
# ----------------------------------------------------------------------------

def _spec_batched(shape, nb):
    nd = len(shape)
    return pl.BlockSpec((nb,) + tuple(shape[1:]),
                        lambda b, _nd=nd: (b,) + (0,) * (_nd - 1))


def _spec_shared(shape):
    nd = len(shape)
    return pl.BlockSpec(tuple(shape), lambda b, _nd=nd: (0,) * _nd)


def _run(kernel, out_shape, args, batched, scratch_shapes=(), nb=1):
    n = out_shape.shape[0]
    steps = max(n // nb, 1)
    in_specs = [_spec_batched(a.shape, nb) if flag else _spec_shared(a.shape)
                for a, flag in zip(args, batched)]
    return pl.pallas_call(
        kernel,
        out_shape=out_shape,
        grid=(steps,),
        in_specs=in_specs,
        out_specs=_spec_batched(out_shape.shape, nb),
        scratch_shapes=list(scratch_shapes),
        compiler_params=pltpu.CompilerParams(
            dimension_semantics=("parallel",),
            vmem_limit_bytes=_vmem_limit_bytes(),
        ),
    )(*args)


def _subsample(v, stride, Ho, Wo):
    """Pick (h*stride, w*stride) from v:(nb, Ho*stride, Wo*stride, C) using
    reshape + static integer indexing only (interpret- and Mosaic-safe; no
    strided ref reads)."""
    if stride == 1:
        return v
    nb, _, _, c = v.shape
    v = v.reshape(nb, Ho * stride, Wo, stride, c)[:, :, :, 0, :]
    v = v.reshape(nb, Ho, stride, Wo, c)[:, :, 0, :, :]
    return v


# ----------------------------------------------------------------------------
# Pallas kernels
# ----------------------------------------------------------------------------

def _sep_unit_kernel(*refs, H, W, Ho, Wo, stride, dilation, pad,
                     apply_relu, add_skip):
    """[ReLU] -> depthwise3x3 -> BN -> pointwise1x1 -> BN [-> +skip], fused."""
    if add_skip:
        x_ref, dw_ref, pw_ref, b_ref, skip_ref, o_ref, xpad_ref = refs
    else:
        x_ref, dw_ref, pw_ref, b_ref, o_ref, xpad_ref = refs
        skip_ref = None
    nb, _, _, cin = x_ref.shape
    cout = o_ref.shape[3]
    _, Hp, Wp, _ = xpad_ref.shape
    zdt = xpad_ref.dtype

    xv = x_ref[...]
    if apply_relu:
        xv = jnp.maximum(xv, 0)

    # zero only the halo of the padded scratch; interior is written directly.
    if pad > 0:
        xpad_ref[:, :pad, :, :] = jnp.zeros((nb, pad, Wp, cin), zdt)
        xpad_ref[:, pad:pad + H, :pad, :] = jnp.zeros((nb, H, pad, cin), zdt)
    if Hp - pad - H > 0:
        xpad_ref[:, pad + H:, :, :] = jnp.zeros((nb, Hp - pad - H, Wp, cin), zdt)
    if Wp - pad - W > 0:
        xpad_ref[:, pad:pad + H, pad + W:, :] = (
            jnp.zeros((nb, H, Wp - pad - W, cin), zdt))
    xpad_ref[:, pad:pad + H, pad:pad + W, :] = xv.astype(zdt)

    # vectorized depthwise 3x3: 9 whole-plane shifted MACs, f32 accumulation.
    wdw = dw_ref[...]                                       # (9, cin) f32
    acc = jnp.zeros((nb, Ho, Wo, cin), jnp.float32)
    for ky in range(3):
        for kx in range(3):
            y0, x0 = ky * dilation, kx * dilation
            tap = xpad_ref[:, y0:y0 + Ho * stride, x0:x0 + Wo * stride, :]
            tap = _subsample(tap, stride, Ho, Wo)
            acc = acc + tap.astype(jnp.float32) * wdw[ky * 3 + kx]

    # pointwise 1x1 on the MXU; both BatchNorms folded into pw / bias.
    z = acc.reshape(nb * Ho * Wo, cin).astype(jnp.bfloat16)
    out = jnp.dot(z, pw_ref[...], preferred_element_type=jnp.float32)
    out = out + b_ref[...]
    if add_skip:
        out = out + skip_ref[...].reshape(nb * Ho * Wo, cout).astype(jnp.float32)
    # single lane-dense whole-block store
    o_ref[...] = out.reshape(nb, Ho, Wo, cout).astype(o_ref.dtype)


def _conv3x3_s1_kernel(x_ref, w_ref, b_ref, o_ref, xpad_ref, *, H, W, relu):
    """Full 3x3 conv (stride 1, pad 1) + BN (+ReLU): whole-plane im2col taps
    in VMEM feeding 9 accumulated MXU matmuls."""
    nb, _, _, cin = x_ref.shape
    cout = o_ref.shape[3]
    zdt = xpad_ref.dtype

    xpad_ref[:, :1, :, :] = jnp.zeros((nb, 1, W + 2, cin), zdt)
    xpad_ref[:, H + 1:, :, :] = jnp.zeros((nb, 1, W + 2, cin), zdt)
    xpad_ref[:, 1:H + 1, :1, :] = jnp.zeros((nb, H, 1, cin), zdt)
    xpad_ref[:, 1:H + 1, W + 1:, :] = jnp.zeros((nb, H, 1, cin), zdt)
    xpad_ref[:, 1:H + 1, 1:W + 1, :] = x_ref[...].astype(zdt)

    wv = w_ref[...]                                          # (9, cin, cout)
    acc = jnp.zeros((nb * H * W, cout), jnp.float32)
    for ky in range(3):
        for kx in range(3):
            tap = xpad_ref[:, ky:ky + H, kx:kx + W, :]
            z = tap.reshape(nb * H * W, cin).astype(jnp.bfloat16)
            acc = acc + jnp.dot(z, wv[ky * 3 + kx],
                                preferred_element_type=jnp.float32)
    out = acc + b_ref[...]
    if relu:
        out = jnp.maximum(out, 0.0)
    o_ref[...] = out.reshape(nb, H, W, cout).astype(o_ref.dtype)


def _patch_matmul_kernel(x_ref, w_ref, b_ref, o_ref, *, relu):
    """Stem conv1 after host-side im2col packing: one matmul + BN (+ReLU)."""
    nb, Ho, Wo, k = x_ref.shape
    cout = o_ref.shape[3]
    z = x_ref[...].reshape(nb * Ho * Wo, k).astype(jnp.bfloat16)
    out = jnp.dot(z, w_ref[...], preferred_element_type=jnp.float32)
    out = out + b_ref[...]
    if relu:
        out = jnp.maximum(out, 0.0)
    o_ref[...] = out.reshape(nb, Ho, Wo, cout).astype(o_ref.dtype)


def _skip_kernel(*refs, H, W, Ho, Wo, stride, apply_relu):
    """Block skip branch: [ReLU] -> strided 1x1 conv -> BN, fused."""
    if stride == 1:
        x_ref, w_ref, b_ref, o_ref = refs
        xs_ref = None
    else:
        x_ref, w_ref, b_ref, o_ref, xs_ref = refs
    nb, _, _, cin = x_ref.shape
    cout = o_ref.shape[3]

    xv = x_ref[...]
    if apply_relu:
        xv = jnp.maximum(xv, 0)

    if stride == 1:
        sub = xv
    else:
        hs, ws = Ho * stride, Wo * stride
        zdt = xs_ref.dtype
        if hs > H:
            xs_ref[:, H:, :, :] = jnp.zeros((nb, hs - H, ws, cin), zdt)
        if ws > W:
            xs_ref[:, :H, W:, :] = jnp.zeros((nb, H, ws - W, cin), zdt)
        xs_ref[:, :H, :W, :] = xv.astype(zdt)
        sub = _subsample(xs_ref[...], stride, Ho, Wo)

    z = sub.reshape(nb * Ho * Wo, cin).astype(jnp.bfloat16)
    out = jnp.dot(z, w_ref[...], preferred_element_type=jnp.float32)
    out = out + b_ref[...]
    o_ref[...] = out.reshape(nb, Ho, Wo, cout).astype(o_ref.dtype)


def _head_kernel(x_ref, w_ref, b_ref, o_ref):
    """Final ReLU -> global average pool -> FC, whole batch in one step."""
    xv = jnp.maximum(x_ref[...].astype(jnp.float32), 0.0)
    pooled = jnp.mean(xv, axis=(1, 2))                       # (N, C)
    out = jnp.dot(pooled.astype(jnp.bfloat16), w_ref[...],
                  preferred_element_type=jnp.float32)
    o_ref[...] = out + b_ref[...]


# ----------------------------------------------------------------------------
# Layer wrappers (jitted per unique shape/config so identical layers share one
# compiled kernel, e.g. the 16 mid blocks compile just two kernel variants).
# ----------------------------------------------------------------------------

@functools.partial(jax.jit, static_argnames=("stride", "dilation", "apply_relu"))
def _sep_unit_call(x, dw, pw, bias, skip, *, stride, dilation, apply_relu):
    n, H, W, cin = x.shape
    cout = pw.shape[1]
    pad = (stride - 1 + 2 * dilation) // 2
    Ho = (H + 2 * pad - 2 * dilation - 1) // stride + 1
    Wo = (W + 2 * pad - 2 * dilation - 1) // stride + 1
    Hp = max(H + 2 * pad, 2 * dilation + Ho * stride)
    Wp = max(W + 2 * pad, 2 * dilation + Wo * stride)
    add_skip = skip is not None

    per_b = 2 * (H * W * cin + Ho * Wo * cout + Hp * Wp * cin) + 4 * Ho * Wo * cin
    nb = _pick_nb(n, per_b)

    kern = functools.partial(
        _sep_unit_kernel, H=H, W=W, Ho=Ho, Wo=Wo, stride=stride,
        dilation=dilation, pad=pad, apply_relu=apply_relu, add_skip=add_skip)
    args = [x, dw, pw, bias]
    batched = [True, False, False, False]
    if add_skip:
        args.append(skip)
        batched.append(True)
    out = jax.ShapeDtypeStruct((n, Ho, Wo, cout), jnp.bfloat16)
    scratch = [pltpu.VMEM((nb, Hp, Wp, cin), jnp.bfloat16)]
    return _run(kern, out, args, batched, scratch, nb=nb)


def sep_unit_forward(x, unit, skip=None, force_relu=False):
    return _sep_unit_call(
        x, unit["dw"], unit["pw"], unit["bias"], skip,
        stride=unit["stride"], dilation=unit["dilation"],
        apply_relu=bool(unit["relu"] or force_relu))


@functools.partial(jax.jit, static_argnames=("relu",))
def _conv3x3_s1_call(x, w, b, *, relu):
    n, H, W, cin = x.shape
    cout = w.shape[2]
    per_b = 2 * (H * W * (cin + cout) + (H + 2) * (W + 2) * cin) + 4 * H * W * cout
    nb = _pick_nb(n, per_b)
    kern = functools.partial(_conv3x3_s1_kernel, H=H, W=W, relu=relu)
    out = jax.ShapeDtypeStruct((n, H, W, cout), jnp.bfloat16)
    scratch = [pltpu.VMEM((nb, H + 2, W + 2, cin), jnp.bfloat16)]
    return _run(kern, out, [x, w, b], [True, False, False], scratch, nb=nb)


@jax.jit
def _conv1_call(x_nhwc, w, b):
    # Stem conv1 (stride 2): im2col-pack the 3-channel input on the host to a
    # lane-dense K axis (27 -> pad to w.shape[0]) and do a single MXU matmul.
    n, H, W, cin = x_nhwc.shape
    stride = 2
    Ho = (H + 2 - 3) // stride + 1
    Wo = (W + 2 - 3) // stride + 1
    kp = w.shape[0]
    cout = w.shape[1]

    xp = jnp.pad(x_nhwc, ((0, 0), (1, 1), (1, 1), (0, 0)))
    taps = []
    for ky in range(3):
        for kx in range(3):
            taps.append(xp[:, ky:ky + 2 * (Ho - 1) + 1:2,
                           kx:kx + 2 * (Wo - 1) + 1:2, :])
    patches = jnp.concatenate(taps, axis=-1)                 # (n, Ho, Wo, 9*cin)
    patches = jnp.pad(
        patches, ((0, 0), (0, 0), (0, 0), (0, kp - patches.shape[-1]))
    ).astype(jnp.bfloat16)

    per_b = 2 * (Ho * Wo * (kp + cout))
    nb = _pick_nb(n, per_b)
    kern = functools.partial(_patch_matmul_kernel, relu=True)
    out = jax.ShapeDtypeStruct((n, Ho, Wo, cout), jnp.bfloat16)
    return _run(kern, out, [patches, w, b], [True, False, False], nb=nb)


@functools.partial(jax.jit, static_argnames=("stride", "apply_relu"))
def _skip_call(x, w, b, *, stride, apply_relu):
    n, H, W, cin = x.shape
    cout = w.shape[1]
    Ho = (H - 1) // stride + 1
    Wo = (W - 1) // stride + 1
    per_b = 2 * (H * W * cin + Ho * Wo * cout + Ho * Wo * stride * stride * cin)
    nb = _pick_nb(n, per_b)
    kern = functools.partial(_skip_kernel, H=H, W=W, Ho=Ho, Wo=Wo,
                             stride=stride, apply_relu=apply_relu)
    out = jax.ShapeDtypeStruct((n, Ho, Wo, cout), jnp.bfloat16)
    scratch = []
    if stride > 1:
        scratch = [pltpu.VMEM((nb, Ho * stride, Wo * stride, cin), jnp.bfloat16)]
    return _run(kern, out, [x, w, b], [True, False, False], scratch, nb=nb)


@jax.jit
def _head_call(x, w, b):
    n = x.shape[0]
    out = jax.ShapeDtypeStruct((n, w.shape[1]), jnp.float32)
    # single grid step over the whole batch: M = batch, FC weight DMA'd once.
    return _run(_head_kernel, out, [x, w, b], [True, False, False], nb=n)


# ----------------------------------------------------------------------------
# Network structure (mirrors Xception65.forward, eval-mode BN, drop_rate=0)
# ----------------------------------------------------------------------------

def block_forward(x, blk, pre_relu=False):
    if blk["skip"] is not None:
        skip = _skip_call(x, blk["skip"]["w"], blk["skip"]["bias"],
                          stride=blk["skip"]["stride"], apply_relu=pre_relu)
    else:
        skip = x      # identity skip (mid blocks): pre-ReLU block input
    y = x
    n_units = len(blk["units"])
    for i, unit in enumerate(blk["units"]):
        y = sep_unit_forward(y, unit,
                             skip=skip if i == n_units - 1 else None,
                             force_relu=(pre_relu and i == 0))
    return y


def xception65_forward(x_nchw, params):
    x = jnp.transpose(x_nchw, (0, 2, 3, 1)).astype(jnp.float32)   # NCHW -> NHWC

    x = _conv1_call(x, params["conv1"]["w"], params["conv1"]["bias"])
    x = _conv3x3_s1_call(x, params["conv2"]["w"], params["conv2"]["bias"],
                         relu=True)

    x = block_forward(x, params["block1"])
    x = block_forward(x, params["block2"], pre_relu=True)   # relu after block1
    x = block_forward(x, params["block3"])
    for blk in params["mid"]:
        x = block_forward(x, blk)
    x = block_forward(x, params["block20"])

    # relu after block20 / bn3 / bn4 are folded into conv3/conv4/conv5.
    x = sep_unit_forward(x, params["conv3"])
    x = sep_unit_forward(x, params["conv4"])
    x = sep_unit_forward(x, params["conv5"])

    # TODO(synk): dropout skipped (drop_rate=0.0 in the reference config).
    logits = _head_call(x, params["fc"]["w"], params["fc"]["bias"])
    return logits[:, :params["fc"]["num_classes"]]


# ----------------------------------------------------------------------------
# Deterministic parameter construction with BN folding
# ----------------------------------------------------------------------------

class ParamGen:
    def __init__(self, seed=0):
        self.key = jax.random.PRNGKey(seed)
        self.count = 0

    def _next(self):
        self.count += 1
        return jax.random.fold_in(self.key, self.count)

    def _normal(self, shape, std):
        return std * jax.random.normal(self._next(), shape, jnp.float32)

    def _bn(self, c, eps=1e-5):
        gamma = 1.0 + 0.1 * jax.random.normal(self._next(), (c,), jnp.float32)
        beta = 0.1 * jax.random.normal(self._next(), (c,), jnp.float32)
        mean = 0.1 * jax.random.normal(self._next(), (c,), jnp.float32)
        var = 1.0 + 0.1 * jnp.abs(jax.random.normal(self._next(), (c,), jnp.float32))
        scale = gamma / jnp.sqrt(var + eps)
        shift = beta - mean * scale
        return scale, shift

    def sep_unit(self, cin, cout, stride=1, dilation=1, relu=True):
        # dw -> bn(s1,b1) -> pw -> bn(s2,b2) folded exactly into (dw, pw_f, bias)
        dw = self._normal((3, 3, cin), (2.0 / 9.0) ** 0.5)
        s1, b1 = self._bn(cin)
        pw = self._normal((cin, cout), (2.0 / cin) ** 0.5)
        s2, b2 = self._bn(cout)
        pw_f = (s1[:, None] * pw) * s2[None, :]
        bias = ((b1 @ pw) * s2 + b2).reshape(1, cout)
        return {"dw": dw.reshape(9, cin), "pw": pw_f.astype(jnp.bfloat16),
                "bias": bias, "stride": stride, "dilation": dilation,
                "relu": relu}

    def skip(self, cin, cout, stride):
        w = self._normal((cin, cout), (2.0 / cin) ** 0.5)
        s, b = self._bn(cout)
        return {"w": (w * s[None, :]).astype(jnp.bfloat16),
                "bias": b.reshape(1, cout), "stride": stride}

    def conv1(self, cin, cout):
        # stem conv1 weights packed to (K, cout) with K = round_up(9*cin, 32)
        w = self._normal((3, 3, cin, cout), (2.0 / (9.0 * cin)) ** 0.5)
        s, b = self._bn(cout)
        w_f = (w * s[None, None, None, :]).reshape(9 * cin, cout)
        kp = _round_up(9 * cin, 32)
        w_f = jnp.pad(w_f, ((0, kp - 9 * cin), (0, 0)))
        return {"w": w_f.astype(jnp.bfloat16), "bias": b.reshape(1, cout)}

    def conv3x3(self, cin, cout):
        w = self._normal((3, 3, cin, cout), (2.0 / (9.0 * cin)) ** 0.5)
        s, b = self._bn(cout)
        w_f = (w * s[None, None, None, :]).reshape(9, cin, cout)
        return {"w": w_f.astype(jnp.bfloat16), "bias": b.reshape(1, cout)}

    def head(self, cin, num_classes):
        ncp = max(128, _round_up(num_classes, 128))
        w = self._normal((cin, num_classes), (1.0 / cin) ** 0.5)
        b = 0.01 * jax.random.normal(self._next(), (num_classes,), jnp.float32)
        w = jnp.pad(w, ((0, 0), (0, ncp - num_classes)))
        b = jnp.pad(b, (0, ncp - num_classes)).reshape(1, ncp)
        return {"w": w.astype(jnp.bfloat16), "bias": b,
                "num_classes": num_classes}

    def block(self, inplanes, planes, num_reps, stride=1, dilation=1,
              start_with_relu=True, grow_first=True, is_last=False):
        blk = {}
        if planes != inplanes or stride != 1:
            blk["skip"] = self.skip(inplanes, planes, stride)
        else:
            blk["skip"] = None
        units = []
        filters = inplanes
        if grow_first:
            units.append(self.sep_unit(inplanes, planes, 1, dilation,
                                       relu=bool(start_with_relu)))
            filters = planes
        for _ in range(num_reps - 1):
            units.append(self.sep_unit(filters, filters, 1, dilation,
                                       relu=bool(grow_first or start_with_relu)))
        if not grow_first:
            units.append(self.sep_unit(inplanes, planes, 1, dilation, relu=True))
        if stride != 1:
            units.append(self.sep_unit(planes, planes, stride, 1, relu=True))
        elif is_last:
            units.append(self.sep_unit(planes, planes, 1, dilation, relu=True))
        blk["units"] = units
        return blk


def build_xception65_params(num_classes=1000, in_chans=3, seed=0):
    # output_stride = 32: entry_block3_stride=2, exit_block20_stride=2,
    # middle_block_dilation=1, exit_block_dilations=(1, 1)
    pg = ParamGen(seed)
    p = {}
    p["conv1"] = pg.conv1(in_chans, 32)
    p["conv2"] = pg.conv3x3(32, 64)
    p["block1"] = pg.block(64, 128, 2, stride=2, start_with_relu=False)
    p["block2"] = pg.block(128, 256, 2, stride=2, start_with_relu=False,
                           grow_first=True)
    p["block3"] = pg.block(256, 728, 2, stride=2, start_with_relu=True,
                           grow_first=True, is_last=True)
    p["mid"] = [pg.block(728, 728, 3, stride=1, dilation=1,
                         start_with_relu=True, grow_first=True)
                for _ in range(16)]
    p["block20"] = pg.block(728, 1024, 2, stride=2, dilation=1,
                            start_with_relu=True, grow_first=False,
                            is_last=True)
    p["conv3"] = pg.sep_unit(1024, 1536, 1, 1, relu=True)
    p["conv4"] = pg.sep_unit(1536, 1536, 1, 1, relu=True)
    p["conv5"] = pg.sep_unit(1536, 2048, 1, 1, relu=True)
    p["fc"] = pg.head(2048, num_classes)
    return p


# ----------------------------------------------------------------------------
# Main
# ----------------------------------------------------------------------------

if __name__ == "__main__":
    key = jax.random.PRNGKey(0)
    # Small but architecture-consistent input: NCHW, 3 channels, 32x32 spatial
    # (total stride 32 -> final feature map 1x1, 2048 features).
    x = jax.random.normal(key, (2, 3, 32, 32), jnp.float32)

    params = build_xception65_params(num_classes=1000, in_chans=3, seed=0)

    logits = xception65_forward(x, params)
    logits = jax.block_until_ready(logits)

    assert logits.shape == (2, 1000), logits.shape
    assert bool(jnp.all(jnp.isfinite(logits)))
    print("KERNEL_OK")
</pallas_src>

<mosaic_0001>
module attributes {stable_mosaic.version = 11 : i64} {
  func.func @_patch_matmul_kernel(%arg0: i32, %arg1: memref<2x16x16x32xbf16, #tpu.memory_space<vmem>>, %arg2: memref<32x32xbf16, #tpu.memory_space<vmem>>, %arg3: memref<1x32xf32, #tpu.memory_space<vmem>>, %arg4: memref<2x16x16x32xbf16, #tpu.memory_space<vmem>>) attributes {dimension_semantics = [#tpu.dimension_semantics<parallel>], iteration_bounds = array<i64: 1>, scalar_prefetch = 0 : i64, scratch_operands = 0 : i64, tpu.core_type = #tpu.core_type<tc>, window_params = [{transform_indices = @transform_0, window_bounds = array<i64: 2, 16, 16, 32>}, {pipeline_mode = #tpu.pipeline_mode<synchronous>, transform_indices = @transform_1, window_bounds = array<i64: 32, 32>}, {pipeline_mode = #tpu.pipeline_mode<synchronous>, transform_indices = @transform_2, window_bounds = array<i64: 1, 32>}, {transform_indices = @transform_3, window_bounds = array<i64: 2, 16, 16, 32>}]} {
    %c0 = arith.constant 0 : index
    %c0_0 = arith.constant 0 : index
    %c0_1 = arith.constant 0 : index
    %c0_2 = arith.constant 0 : index
    %0 = vector.load %arg1[%c0, %c0_0, %c0_1, %c0_2] : memref<2x16x16x32xbf16, #tpu.memory_space<vmem>>, vector<2x16x16x32xbf16>
    %1 = vector.shape_cast %0 : vector<2x16x16x32xbf16> to vector<512x32xbf16>
    %c0_3 = arith.constant 0 : index
    %c0_4 = arith.constant 0 : index
    %2 = vector.load %arg2[%c0_3, %c0_4] : memref<32x32xbf16, #tpu.memory_space<vmem>>, vector<32x32xbf16>
    %cst = arith.constant dense<0.000000e+00> : vector<512x32xf32>
    %3 = tpu.matmul %1, %2, %cst {dimension_numbers = #tpu.dot_dimension_numbers<[1], [0], [0], [1], [0, 0, 1, 1], [], []>} : vector<512x32xbf16>, vector<32x32xbf16>, vector<512x32xf32> -> vector<512x32xf32>
    %c0_5 = arith.constant 0 : index
    %c0_6 = arith.constant 0 : index
    %4 = vector.load %arg3[%c0_5, %c0_6] : memref<1x32xf32, #tpu.memory_space<vmem>>, vector<1x32xf32>
    %5 = vector.broadcast %4 : vector<1x32xf32> to vector<512x32xf32>
    %6 = arith.addf %3, %5 : vector<512x32xf32>
    %cst_7 = arith.constant 0.000000e+00 : f32
    %7 = vector.broadcast %cst_7 : f32 to vector<512x32xf32>
    %8 = arith.maximumf %6, %7 : vector<512x32xf32>
    %9 = vector.shape_cast %8 : vector<512x32xf32> to vector<2x16x16x32xf32>
    %10 = arith.truncf %9 : vector<2x16x16x32xf32> to vector<2x16x16x32xbf16>
    %c0_8 = arith.constant 0 : index
    %c0_9 = arith.constant 0 : index
    %c0_10 = arith.constant 0 : index
    %c0_11 = arith.constant 0 : index
    %11 = vector.load %arg4[%c0_8, %c0_9, %c0_10, %c0_11] : memref<2x16x16x32xbf16, #tpu.memory_space<vmem>>, vector<2x16x16x32xbf16>
    tpu.vector_store %arg4[%c0_8, %c0_9, %c0_10, %c0_11], %10 {strides = array<i32>} : memref<2x16x16x32xbf16, #tpu.memory_space<vmem>>, vector<2x16x16x32xbf16>,
    return
  }
  func.func @transform_0(%arg0: i32) -> (i32, i32, i32, i32) {
    %c0_i32 = arith.constant 0 : i32
    %c0_i32_0 = arith.constant 0 : i32
    %c0_i32_1 = arith.constant 0 : i32
    %c0_i32_2 = arith.constant 0 : i32
    return %arg0, %c0_i32, %c0_i32_0, %c0_i32_1 : i32, i32, i32, i32
  }
  func.func @transform_1(%arg0: i32) -> (i32, i32) {
    %c0_i32 = arith.constant 0 : i32
    %c0_i32_0 = arith.constant 0 : i32
    %c0_i32_1 = arith.constant 0 : i32
    return %c0_i32, %c0_i32_0 : i32, i32
  }
  func.func @transform_2(%arg0: i32) -> (i32, i32) {
    %c0_i32 = arith.constant 0 : i32
    %c0_i32_0 = arith.constant 0 : i32
    %c0_i32_1 = arith.constant 0 : i32
    return %c0_i32, %c0_i32_0 : i32, i32
  }
  func.func @transform_3(%arg0: i32) -> (i32, i32, i32, i32) {
    %c0_i32 = arith.constant 0 : i32
    %c0_i32_0 = arith.constant 0 : i32
    %c0_i32_1 = arith.constant 0 : i32
    %c0_i32_2 = arith.constant 0 : i32
    return %arg0, %c0_i32, %c0_i32_0, %c0_i32_1 : i32, i32, i32, i32
  }
}

</mosaic_0001>

<bundles_post_ra>
// kernel: _conv1_call.1
= control target key start
LH: loop header
LB: loop body
LE: loop exit
PB: predicated region body
PF: predicated region fallthrough
CT: control target
= control target key end

     0   :  { %vm263_vm0 = vcmask 261120   ;;  %s1714_s0 = inlined_call_operand.vmem [shape: bf16[2,16,16,32], index: 0, kind: input, shape index: {}]   ;;  %s1715_s1 = inlined_call_operand.vmem [shape: bf16[32,32], index: 1, kind: input, shape index: {}]   ;;  %s1716_s2 = inlined_call_operand.vmem [shape: f32[1,32], index: 2, kind: input, shape index: {}]   ;;  %s1717_s3 = inlined_call_operand.hbm [shape: bf16[2,16,16,32], index: 3, kind: output, shape index: {}]  }
   0x1   :  { %v1354_v0 = vld [vmem:[%s1715_s1] sm:$0xff]   ;;  %v1355_v1 = vld [vmem:[%s1715_s1 + $0x8] sm:$0xff]   ;;  %v1360_v6 = vld [vmem:[%s1714_s0 + $0x10] sm:$0xff]  }
   0x2   :  { %1279 = vmatprep.subr.bf16.mxu0 %v1354_v0  ;;  %1347 = vmatprep.subr.bf16.mxu1 %v1354_v0  ;;  %v1356_v2 = vld [vmem:[%s1714_s0] sm:$0xff]   ;;  %v1358_v4 = vld [vmem:[%s1714_s0 + $0x8] sm:$0xff]   ;;  %v1361_v7 = vld [vmem:[%s1714_s0 + $0x90] sm:$0xff]  }
   0x3   :  { %1280 = vmatpush3.bf16.msra.mxu0 %v1354_v0  ;;  %1349 = vmatpush3.bf16.msra.mxu1 %v1354_v0  ;;  %v1357_v3 = vld [vmem:[%s1714_s0 + $0x80] sm:$0xff]   ;;  %v1359_v5 = vld [vmem:[%s1714_s0 + $0x88] sm:$0xff]   ;;  %v1362_v8 = vld [vmem:[%s1714_s0 + $0x18] sm:$0xff]  }
   0x4   :  { %1281 = vmatprep.subr.bf16.mxu0 %v1355_v1  ;;  %1348 = vmatprep.subr.bf16.mxu1 %v1355_v1  ;;  %v1363_v9 = vld [vmem:[%s1714_s0 + $0x98] sm:$0xff]   ;;  %v1364_v10 = vld [vmem:[%s1714_s0 + $0x20] sm:$0xff]   ;;  %v1366_v12 = vld [vmem:[%s1714_s0 + $0x28] sm:$0xff]  }
   0x5   :  { %1283 = vmatprep.mubr.msk.bf16.mxu0 %vm263_vm0, %v1356_v2  ;;  %1315 = vmatprep.mubr.msk.bf16.mxu1 %vm263_vm0, %v1357_v3  ;;  %v1365_v11 = vld [vmem:[%s1714_s0 + $0xa0] sm:$0xff]   ;;  %v1367_v13 = vld [vmem:[%s1714_s0 + $0xa8] sm:$0xff]   ;;  %v1368_v14 = vld [vmem:[%s1714_s0 + $0x30] sm:$0xff]  }
   0x6   :  { %v1369_v15 = vld [vmem:[%s1714_s0 + $0xb0] sm:$0xff]   ;;  %v1370_v16 = vld [vmem:[%s1714_s0 + $0x38] sm:$0xff]   ;;  %v1372_v18 = vld [vmem:[%s1714_s0 + $0x40] sm:$0xff]  }
   0x7   :  { %1282 = vmatpush3.bf16.msra.mxu0 %v1355_v1  ;;  %1350 = vmatpush3.bf16.msra.mxu1 %v1355_v1  ;;  %v1371_v17 = vld [vmem:[%s1714_s0 + $0xb8] sm:$0xff]   ;;  %v1373_v19 = vld [vmem:[%s1714_s0 + $0xc0] sm:$0xff]  }
   0xa   :  { %1284 = vmatmul.mubr.msk.bf16.vlgmr.msra.gmra.mrb[0].mxu0 %vm263_vm0, %v1358_v4  ;;  %1316 = vmatmul.mubr.msk.bf16.vlgmr.msra.gmra.mrb[0].mxu1 %vm263_vm0, %v1359_v5 }
   0xb   :  { %1287 = vmatprep.mubr.msk.bf16.mxu0 %vm263_vm0, %v1360_v6  ;;  %1319 = vmatprep.mubr.msk.bf16.mxu1 %vm263_vm0, %v1361_v7 }
  0x12   :  { %1288 = vmatmul.mubr.msk.bf16.gmra.mrb[4].mxu0 %vm263_vm0, %v1362_v8  ;;  %1320 = vmatmul.mubr.msk.bf16.gmra.mrb[4].mxu1 %vm263_vm0, %v1363_v9 }
  0x13   :  { %1291 = vmatprep.mubr.msk.bf16.mxu0 %vm263_vm0, %v1364_v10  ;;  %1323 = vmatprep.mubr.msk.bf16.mxu1 %vm263_vm0, %v1365_v11 }
  0x1a   :  { %1292 = vmatmul.mubr.msk.bf16.gmra.mrb[8].mxu0 %vm263_vm0, %v1366_v12  ;;  %1324 = vmatmul.mubr.msk.bf16.gmra.mrb[8].mxu1 %vm263_vm0, %v1367_v13 }
  0x1b   :  { %1295 = vmatprep.mubr.msk.bf16.mxu0 %vm263_vm0, %v1368_v14  ;;  %1327 = vmatprep.mubr.msk.bf16.mxu1 %vm263_vm0, %v1369_v15 }
  0x22   :  { %1296 = vmatmul.mubr.msk.bf16.gmra.mrb[12].mxu0 %vm263_vm0, %v1370_v16  ;;  %1328 = vmatmul.mubr.msk.bf16.gmra.mrb[12].mxu1 %vm263_vm0, %v1371_v17 }
  0x23   :  { %8 = vsyncpa [#allocation3], 0  ;;  %1299 = vmatprep.mubr.msk.bf16.mxu0 %vm263_vm0, %v1372_v18  ;;  %1331 = vmatprep.mubr.msk.bf16.mxu1 %vm263_vm0, %v1373_v19  ;;  %v1374_v20 = vld [vmem:[%s1714_s0 + $0x48] sm:$0xff]   ;;  %v1376_v22 = vld [vmem:[%s1714_s0 + $0x50] sm:$0xff]   ;;  %vm969_vm1 = vcmask 257024  }
  0x24   :  { %v1375_v21 = vld [vmem:[%s1714_s0 + $0xc8] sm:$0xff]   ;;  %v1377_v23 = vld [vmem:[%s1714_s0 + $0xd0] sm:$0xff]   ;;  %v1378_v24 = vld [vmem:[%s1714_s0 + $0x58] sm:$0xff]  }
  0x25   :  { %v1379_v25 = vld [vmem:[%s1714_s0 + $0xd8] sm:$0xff]   ;;  %v1380_v26 = vld [vmem:[%s1714_s0 + $0x60] sm:$0xff]   ;;  %v1382_v28 = vld [vmem:[%s1714_s0 + $0x68] sm:$0xff]  }
  0x26   :  { %v1381_v27 = vld [vmem:[%s1714_s0 + $0xe0] sm:$0xff]   ;;  %v1383_v29 = vld [vmem:[%s1714_s0 + $0xe8] sm:$0xff]   ;;  %v1384_v30 = vld [vmem:[%s1714_s0 + $0x70] sm:$0xff]  }
  0x27   :  { %v1385_v31 = vld [vmem:[%s1714_s0 + $0xf0] sm:$0xff]   ;;  %v1386_v32 = vld [vmem:[%s1714_s0 + $0x78] sm:$0xff]   ;;  %v1572_v34 = vld [vmem:[%s1716_s2] ss:$0 sm:$0xff] }
  0x28   :  { %v1387_v33 = vld [vmem:[%s1714_s0 + $0xf8] sm:$0xff]   ;;  %s1412_s0 = smov [#allocation2]  }
  0x29   :  { %s1039_s2 = sshll.u32 %s1412_s0, 4  ;;  %s1040_s2 = int_to_ptr.vmem [resolvable:$true] %s1039_s2 }
  0x2a   :  { %1300 = vmatmul.mubr.msk.bf16.gmra.mrb[16].mxu0 %vm263_vm0, %v1374_v20  ;;  %1332 = vmatmul.mubr.msk.bf16.gmra.mrb[16].mxu1 %vm263_vm0, %v1375_v21  ;;  %s1388_s25 = scalar_lea.vmem %s1040_s2, 4096  ;;  %p1393_p1 = scmp.lt.s32.totalorder %s1040_s2, %s1040_s2 }
  0x2b   :  { %1303 = vmatprep.mubr.msk.bf16.mxu0 %vm263_vm0, %v1376_v22  ;;  %1335 = vmatprep.mubr.msk.bf16.mxu1 %vm263_vm0, %v1377_v23  ;;  %p1389_p0 = scmp.ne.s32.totalorder %s1040_s2, %s1388_s25  ;;  %p1394_p2 = scmp.lt.s32.totalorder %s1388_s25, %s1388_s25 }
  0x2d   :  { %p1395_p3 = por %p1394_p2, %p1393_p1 }
  0x2f   :  { %p1396_p4 = pnand %p1395_p3, %p1389_p0 }
  0x32   :  { %1304 = vmatmul.mubr.msk.bf16.gmra.mrb[20].mxu0 %vm263_vm0, %v1378_v24  ;;  %1336 = vmatmul.mubr.msk.bf16.gmra.mrb[20].mxu1 %vm263_vm0, %v1379_v25 }
  0x33   :  { %1307 = vmatprep.mubr.msk.bf16.mxu0 %vm263_vm0, %v1380_v26  ;;  %1339 = vmatprep.mubr.msk.bf16.mxu1 %vm263_vm0, %v1381_v27 }
  0x3a   :  { %1308 = vmatmul.mubr.msk.bf16.gmra.mrb[24].mxu0 %vm263_vm0, %v1382_v28  ;;  %1340 = vmatmul.mubr.msk.bf16.gmra.mrb[24].mxu1 %vm263_vm0, %v1383_v29 }
  0x3b   :  { %1311 = vmatprep.mubr.msk.bf16.mxu0 %vm263_vm0, %v1384_v30  ;;  %1343 = vmatprep.mubr.msk.bf16.mxu1 %vm263_vm0, %v1385_v31 }
  0x42   :  { %1312 = vmatmul.mubr.msk.bf16.gmra.mrb[28].mxu0 %vm263_vm0, %v1386_v32  ;;  %1344 = vmatmul.mubr.msk.bf16.gmra.mrb[28].mxu1 %vm263_vm0, %v1387_v33 }
  0xdd   :  { %v1285_v35 = vpop.f32.mrb[0].mxu0  ;;  %v1317_v36 = vpop.f32.mrb[0].mxu1 }
  0xde   :  { %v403_v37 = vadd.f32 %v1285_v35, %v1572_v34  ;;  %v531_v38 = vadd.f32 %v1317_v36, %v1572_v34  ;;  %v394_v39 = vpop.f32.mrb[1].mxu0  ;;  %v522_v40 = vpop.f32.mrb[1].mxu1 }
  0xdf   :  { %v395_v41 = vadd.f32 %v1572_v34, %v394_v39  ;;  %v523_v42 = vadd.f32 %v1572_v34, %v522_v40  ;;  %v1286_v43 = vpop.f32.mrb[2].mxu0  ;;  %v1318_v44 = vpop.f32.mrb[2].mxu1 }
  0xe0   :  { %v651_v45 = vmax.f32 %v403_v37, 0.0  ;;  %v683_v46 = vmax.f32 %v531_v38, 0.0  ;;  %v406_v47 = vadd.f32 %v1286_v43, %v1572_v34  ;;  %v534_v48 = vadd.f32 %v1318_v44, %v1572_v34  ;;  %v397_v49 = vpop.f32.mrb[3].mxu0  ;;  %v525_v50 = vpop.f32.mrb[3].mxu1 }
  0xe1   :  { %v649_v51 = vmax.f32 %v395_v41, 0.0  ;;  %v681_v52 = vmax.f32 %v523_v42, 0.0  ;;  %v398_v53 = vadd.f32 %v1572_v34, %v397_v49  ;;  %v526_v54 = vadd.f32 %v1572_v34, %v525_v50 }
  0xe2   :  { %v1183_v55 = vpack.c.bf16 %v651_v45, %v651_v45  ;;  %v1215_v56 = vpack.c.bf16 %v683_v46, %v683_v46  ;;  %v652_v57 = vmax.f32 %v406_v47, 0.0  ;;  %v684_v58 = vmax.f32 %v534_v48, 0.0 }
  0xe3   :  { %v1181_v59 = vpack.c.bf16 %v649_v51, %v649_v51  ;;  %v1213_v60 = vpack.c.bf16 %v681_v52, %v681_v52  ;;  %v650_v61 = vmax.f32 %v398_v53, 0.0  ;;  %v682_v62 = vmax.f32 %v526_v54, 0.0 }
  0xe4   :  { %972 = vst.msk [vmem:[#allocation2 + $0x8] sm:$0xf] %vm969_vm1, %v1183_v55  ;;  %1004 = vst.msk [vmem:[#allocation2 + $0x88] sm:$0xf] %vm969_vm1, %v1215_v56  ;;  %v1184_v63 = vpack.c.bf16 %v652_v57, %v652_v57  ;;  %v1216_v0 = vpack.c.bf16 %v684_v58, %v684_v58 }
  0xe5   :  { %970 = vst.msk [vmem:[#allocation2] sm:$0xf] %vm969_vm1, %v1181_v59  ;;  %1002 = vst.msk [vmem:[#allocation2 + $0x80] sm:$0xf] %vm969_vm1, %v1213_v60  ;;  %v1182_v1 = vpack.c.bf16 %v650_v61, %v650_v61  ;;  %v1214_v2 = vpack.c.bf16 %v682_v62, %v682_v62  ;;  %v1289_v3 = vpop.f32.mrb[4].mxu0  ;;  %v1321_v4 = vpop.f32.mrb[4].mxu1 }
  0xe6   :  { %973 = vst.msk [vmem:[#allocation2 + $0xc] sm:$0xf] %vm969_vm1, %v1184_v63  ;;  %1005 = vst.msk [vmem:[#allocation2 + $0x8c] sm:$0xf] %vm969_vm1, %v1216_v0  ;;  %v419_v5 = vadd.f32 %v1289_v3, %v1572_v34  ;;  %v547_v6 = vadd.f32 %v1321_v4, %v1572_v34  ;;  %v410_v7 = vpop.f32.mrb[5].mxu0  ;;  %v538_v8 = vpop.f32.mrb[5].mxu1 }
  0xe7   :  { %971 = vst.msk [vmem:[#allocation2 + $0x4] sm:$0xf] %vm969_vm1, %v1182_v1  ;;  %1003 = vst.msk [vmem:[#allocation2 + $0x84] sm:$0xf] %vm969_vm1, %v1214_v2  ;;  %v411_v9 = vadd.f32 %v1572_v34, %v410_v7  ;;  %v539_v10 = vadd.f32 %v1572_v34, %v538_v8  ;;  %v1290_v11 = vpop.f32.mrb[6].mxu0  ;;  %v1322_v12 = vpop.f32.mrb[6].mxu1 }
  0xe8   :  { %v655_v13 = vmax.f32 %v419_v5, 0.0  ;;  %v687_v14 = vmax.f32 %v547_v6, 0.0  ;;  %v422_v15 = vadd.f32 %v1290_v11, %v1572_v34  ;;  %v550_v16 = vadd.f32 %v1322_v12, %v1572_v34  ;;  %v413_v17 = vpop.f32.mrb[7].mxu0  ;;  %v541_v18 = vpop.f32.mrb[7].mxu1 }
  0xe9   :  { %v653_v19 = vmax.f32 %v411_v9, 0.0  ;;  %v685_v20 = vmax.f32 %v539_v10, 0.0  ;;  %v414_v21 = vadd.f32 %v1572_v34, %v413_v17  ;;  %v542_v22 = vadd.f32 %v1572_v34, %v541_v18 }
  0xea   :  { %v1187_v23 = vpack.c.bf16 %v655_v13, %v655_v13  ;;  %v1219_v24 = vpack.c.bf16 %v687_v14, %v687_v14  ;;  %v656_v25 = vmax.f32 %v422_v15, 0.0  ;;  %v688_v26 = vmax.f32 %v550_v16, 0.0 }
  0xeb   :  { %v1185_v27 = vpack.c.bf16 %v653_v19, %v653_v19  ;;  %v1217_v28 = vpack.c.bf16 %v685_v20, %v685_v20  ;;  %v654_v29 = vmax.f32 %v414_v21, 0.0  ;;  %v686_v30 = vmax.f32 %v542_v22, 0.0 }
  0xec   :  { %976 = vst.msk [vmem:[#allocation2 + $0x18] sm:$0xf] %vm969_vm1, %v1187_v23  ;;  %1008 = vst.msk [vmem:[#allocation2 + $0x98] sm:$0xf] %vm969_vm1, %v1219_v24  ;;  %v1188_v31 = vpack.c.bf16 %v656_v25, %v656_v25  ;;  %v1220_v32 = vpack.c.bf16 %v688_v26, %v688_v26 }
  0xed   :  { %974 = vst.msk [vmem:[#allocation2 + $0x10] sm:$0xf] %vm969_vm1, %v1185_v27  ;;  %1006 = vst.msk [vmem:[#allocation2 + $0x90] sm:$0xf] %vm969_vm1, %v1217_v28  ;;  %v1186_v33 = vpack.c.bf16 %v654_v29, %v654_v29  ;;  %v1218_v35 = vpack.c.bf16 %v686_v30, %v686_v30  ;;  %v1293_v36 = vpop.f32.mrb[8].mxu0  ;;  %v1325_v37 = vpop.f32.mrb[8].mxu1 }
  0xee   :  { %977 = vst.msk [vmem:[#allocation2 + $0x1c] sm:$0xf] %vm969_vm1, %v1188_v31  ;;  %1009 = vst.msk [vmem:[#allocation2 + $0x9c] sm:$0xf] %vm969_vm1, %v1220_v32  ;;  %v435_v38 = vadd.f32 %v1293_v36, %v1572_v34  ;;  %v563_v39 = vadd.f32 %v1325_v37, %v1572_v34  ;;  %v426_v40 = vpop.f32.mrb[9].mxu0  ;;  %v554_v41 = vpop.f32.mrb[9].mxu1 }
  0xef   :  { %975 = vst.msk [vmem:[#allocation2 + $0x14] sm:$0xf] %vm969_vm1, %v1186_v33  ;;  %1007 = vst.msk [vmem:[#allocation2 + $0x94] sm:$0xf] %vm969_vm1, %v1218_v35  ;;  %v427_v42 = vadd.f32 %v1572_v34, %v426_v40  ;;  %v555_v43 = vadd.f32 %v1572_v34, %v554_v41  ;;  %v1294_v44 = vpop.f32.mrb[10].mxu0  ;;  %v1326_v45 = vpop.f32.mrb[10].mxu1 }
  0xf0   :  { %v659_v46 = vmax.f32 %v435_v38, 0.0  ;;  %v691_v47 = vmax.f32 %v563_v39, 0.0  ;;  %v438_v48 = vadd.f32 %v1294_v44, %v1572_v34  ;;  %v566_v49 = vadd.f32 %v1326_v45, %v1572_v34  ;;  %v429_v50 = vpop.f32.mrb[11].mxu0  ;;  %v557_v51 = vpop.f32.mrb[11].mxu1 }
  0xf1   :  { %v657_v52 = vmax.f32 %v427_v42, 0.0  ;;  %v689_v53 = vmax.f32 %v555_v43, 0.0  ;;  %v430_v54 = vadd.f32 %v1572_v34, %v429_v50  ;;  %v558_v55 = vadd.f32 %v1572_v34, %v557_v51 }
  0xf2   :  { %v1191_v56 = vpack.c.bf16 %v659_v46, %v659_v46  ;;  %v1223_v57 = vpack.c.bf16 %v691_v47, %v691_v47  ;;  %v660_v58 = vmax.f32 %v438_v48, 0.0  ;;  %v692_v59 = vmax.f32 %v566_v49, 0.0 }
  0xf3   :  { %v1189_v60 = vpack.c.bf16 %v657_v52, %v657_v52  ;;  %v1221_v61 = vpack.c.bf16 %v689_v53, %v689_v53  ;;  %v658_v62 = vmax.f32 %v430_v54, 0.0  ;;  %v690_v63 = vmax.f32 %v558_v55, 0.0 }
  0xf4   :  { %980 = vst.msk [vmem:[#allocation2 + $0x28] sm:$0xf] %vm969_vm1, %v1191_v56  ;;  %1012 = vst.msk [vmem:[#allocation2 + $0xa8] sm:$0xf] %vm969_vm1, %v1223_v57  ;;  %v1192_v0 = vpack.c.bf16 %v660_v58, %v660_v58  ;;  %v1224_v1 = vpack.c.bf16 %v692_v59, %v692_v59 }
  0xf5   :  { %978 = vst.msk [vmem:[#allocation2 + $0x20] sm:$0xf] %vm969_vm1, %v1189_v60  ;;  %1010 = vst.msk [vmem:[#allocation2 + $0xa0] sm:$0xf] %vm969_vm1, %v1221_v61  ;;  %v1190_v2 = vpack.c.bf16 %v658_v62, %v658_v62  ;;  %v1222_v3 = vpack.c.bf16 %v690_v63, %v690_v63  ;;  %v1297_v4 = vpop.f32.mrb[12].mxu0  ;;  %v1329_v5 = vpop.f32.mrb[12].mxu1 }
  0xf6   :  { %981 = vst.msk [vmem:[#allocation2 + $0x2c] sm:$0xf] %vm969_vm1, %v1192_v0  ;;  %1013 = vst.msk [vmem:[#allocation2 + $0xac] sm:$0xf] %vm969_vm1, %v1224_v1  ;;  %v451_v6 = vadd.f32 %v1297_v4, %v1572_v34  ;;  %v579_v7 = vadd.f32 %v1329_v5, %v1572_v34  ;;  %v442_v8 = vpop.f32.mrb[13].mxu0  ;;  %v570_v9 = vpop.f32.mrb[13].mxu1 }
  0xf7   :  { %979 = vst.msk [vmem:[#allocation2 + $0x24] sm:$0xf] %vm969_vm1, %v1190_v2  ;;  %1011 = vst.msk [vmem:[#allocation2 + $0xa4] sm:$0xf] %vm969_vm1, %v1222_v3  ;;  %v443_v10 = vadd.f32 %v1572_v34, %v442_v8  ;;  %v571_v11 = vadd.f32 %v1572_v34, %v570_v9  ;;  %v1298_v12 = vpop.f32.mrb[14].mxu0  ;;  %v1330_v13 = vpop.f32.mrb[14].mxu1 }
  0xf8   :  { %v663_v14 = vmax.f32 %v451_v6, 0.0  ;;  %v695_v15 = vmax.f32 %v579_v7, 0.0  ;;  %v454_v16 = vadd.f32 %v1298_v12, %v1572_v34  ;;  %v582_v17 = vadd.f32 %v1330_v13, %v1572_v34  ;;  %v445_v18 = vpop.f32.mrb[15].mxu0  ;;  %v573_v19 = vpop.f32.mrb[15].mxu1 }
  0xf9   :  { %v661_v20 = vmax.f32 %v443_v10, 0.0  ;;  %v693_v21 = vmax.f32 %v571_v11, 0.0  ;;  %v446_v22 = vadd.f32 %v1572_v34, %v445_v18  ;;  %v574_v23 = vadd.f32 %v1572_v34, %v573_v19 }
  0xfa   :  { %v1195_v24 = vpack.c.bf16 %v663_v14, %v663_v14  ;;  %v1227_v25 = vpack.c.bf16 %v695_v15, %v695_v15  ;;  %v664_v26 = vmax.f32 %v454_v16, 0.0  ;;  %v696_v27 = vmax.f32 %v582_v17, 0.0 }
  0xfb   :  { %v1193_v28 = vpack.c.bf16 %v661_v20, %v661_v20  ;;  %v1225_v29 = vpack.c.bf16 %v693_v21, %v693_v21  ;;  %v662_v30 = vmax.f32 %v446_v22, 0.0  ;;  %v694_v31 = vmax.f32 %v574_v23, 0.0 }
  0xfc   :  { %984 = vst.msk [vmem:[#allocation2 + $0x38] sm:$0xf] %vm969_vm1, %v1195_v24  ;;  %1016 = vst.msk [vmem:[#allocation2 + $0xb8] sm:$0xf] %vm969_vm1, %v1227_v25  ;;  %v1196_v32 = vpack.c.bf16 %v664_v26, %v664_v26  ;;  %v1228_v33 = vpack.c.bf16 %v696_v27, %v696_v27 }
  0xfd   :  { %982 = vst.msk [vmem:[#allocation2 + $0x30] sm:$0xf] %vm969_vm1, %v1193_v28  ;;  %1014 = vst.msk [vmem:[#allocation2 + $0xb0] sm:$0xf] %vm969_vm1, %v1225_v29  ;;  %v1194_v35 = vpack.c.bf16 %v662_v30, %v662_v30  ;;  %v1226_v36 = vpack.c.bf16 %v694_v31, %v694_v31  ;;  %v1301_v37 = vpop.f32.mrb[16].mxu0  ;;  %v1333_v38 = vpop.f32.mrb[16].mxu1 }
  0xfe   :  { %985 = vst.msk [vmem:[#allocation2 + $0x3c] sm:$0xf] %vm969_vm1, %v1196_v32  ;;  %1017 = vst.msk [vmem:[#allocation2 + $0xbc] sm:$0xf] %vm969_vm1, %v1228_v33  ;;  %v467_v39 = vadd.f32 %v1301_v37, %v1572_v34  ;;  %v595_v40 = vadd.f32 %v1333_v38, %v1572_v34  ;;  %v458_v41 = vpop.f32.mrb[17].mxu0  ;;  %v586_v42 = vpop.f32.mrb[17].mxu1 }
  0xff   :  { %983 = vst.msk [vmem:[#allocation2 + $0x34] sm:$0xf] %vm969_vm1, %v1194_v35  ;;  %1015 = vst.msk [vmem:[#allocation2 + $0xb4] sm:$0xf] %vm969_vm1, %v1226_v36  ;;  %v459_v43 = vadd.f32 %v1572_v34, %v458_v41  ;;  %v587_v44 = vadd.f32 %v1572_v34, %v586_v42  ;;  %v1302_v45 = vpop.f32.mrb[18].mxu0  ;;  %v1334_v46 = vpop.f32.mrb[18].mxu1 }
 0x100   :  { %v667_v47 = vmax.f32 %v467_v39, 0.0  ;;  %v699_v48 = vmax.f32 %v595_v40, 0.0  ;;  %v470_v49 = vadd.f32 %v1302_v45, %v1572_v34  ;;  %v598_v50 = vadd.f32 %v1334_v46, %v1572_v34  ;;  %v461_v51 = vpop.f32.mrb[19].mxu0  ;;  %v589_v52 = vpop.f32.mrb[19].mxu1 }
 0x101   :  { %v665_v53 = vmax.f32 %v459_v43, 0.0  ;;  %v697_v54 = vmax.f32 %v587_v44, 0.0  ;;  %v462_v55 = vadd.f32 %v1572_v34, %v461_v51  ;;  %v590_v56 = vadd.f32 %v1572_v34, %v589_v52 }
 0x102   :  { %v1199_v57 = vpack.c.bf16 %v667_v47, %v667_v47  ;;  %v1231_v58 = vpack.c.bf16 %v699_v48, %v699_v48  ;;  %v668_v59 = vmax.f32 %v470_v49, 0.0  ;;  %v700_v60 = vmax.f32 %v598_v50, 0.0 }
 0x103   :  { %v1197_v61 = vpack.c.bf16 %v665_v53, %v665_v53  ;;  %v1229_v62 = vpack.c.bf16 %v697_v54, %v697_v54  ;;  %v666_v63 = vmax.f32 %v462_v55, 0.0  ;;  %v698_v0 = vmax.f32 %v590_v56, 0.0 }
 0x104   :  { %988 = vst.msk [vmem:[#allocation2 + $0x48] sm:$0xf] %vm969_vm1, %v1199_v57  ;;  %1020 = vst.msk [vmem:[#allocation2 + $0xc8] sm:$0xf] %vm969_vm1, %v1231_v58  ;;  %v1200_v1 = vpack.c.bf16 %v668_v59, %v668_v59  ;;  %v1232_v2 = vpack.c.bf16 %v700_v60, %v700_v60 }
 0x105   :  { %986 = vst.msk [vmem:[#allocation2 + $0x40] sm:$0xf] %vm969_vm1, %v1197_v61  ;;  %1018 = vst.msk [vmem:[#allocation2 + $0xc0] sm:$0xf] %vm969_vm1, %v1229_v62  ;;  %v1198_v3 = vpack.c.bf16 %v666_v63, %v666_v63  ;;  %v1230_v4 = vpack.c.bf16 %v698_v0, %v698_v0  ;;  %v1305_v5 = vpop.f32.mrb[20].mxu0  ;;  %v1337_v6 = vpop.f32.mrb[20].mxu1 }
 0x106   :  { %989 = vst.msk [vmem:[#allocation2 + $0x4c] sm:$0xf] %vm969_vm1, %v1200_v1  ;;  %1021 = vst.msk [vmem:[#allocation2 + $0xcc] sm:$0xf] %vm969_vm1, %v1232_v2  ;;  %v483_v7 = vadd.f32 %v1305_v5, %v1572_v34  ;;  %v611_v8 = vadd.f32 %v1337_v6, %v1572_v34  ;;  %v474_v9 = vpop.f32.mrb[21].mxu0  ;;  %v602_v10 = vpop.f32.mrb[21].mxu1 }
 0x107   :  { %987 = vst.msk [vmem:[#allocation2 + $0x44] sm:$0xf] %vm969_vm1, %v1198_v3  ;;  %1019 = vst.msk [vmem:[#allocation2 + $0xc4] sm:$0xf] %vm969_vm1, %v1230_v4  ;;  %v475_v11 = vadd.f32 %v1572_v34, %v474_v9  ;;  %v603_v12 = vadd.f32 %v1572_v34, %v602_v10  ;;  %v1306_v13 = vpop.f32.mrb[22].mxu0  ;;  %v1338_v14 = vpop.f32.mrb[22].mxu1 }
 0x108   :  { %v671_v15 = vmax.f32 %v483_v7, 0.0  ;;  %v703_v16 = vmax.f32 %v611_v8, 0.0  ;;  %v486_v17 = vadd.f32 %v1306_v13, %v1572_v34  ;;  %v614_v18 = vadd.f32 %v1338_v14, %v1572_v34  ;;  %v477_v19 = vpop.f32.mrb[23].mxu0  ;;  %v605_v20 = vpop.f32.mrb[23].mxu1 }
 0x109   :  { %v669_v21 = vmax.f32 %v475_v11, 0.0  ;;  %v701_v22 = vmax.f32 %v603_v12, 0.0  ;;  %v478_v23 = vadd.f32 %v1572_v34, %v477_v19  ;;  %v606_v24 = vadd.f32 %v1572_v34, %v605_v20 }
 0x10a   :  { %v1203_v25 = vpack.c.bf16 %v671_v15, %v671_v15  ;;  %v1235_v26 = vpack.c.bf16 %v703_v16, %v703_v16  ;;  %v672_v27 = vmax.f32 %v486_v17, 0.0  ;;  %v704_v28 = vmax.f32 %v614_v18, 0.0 }
 0x10b   :  { %v1201_v29 = vpack.c.bf16 %v669_v21, %v669_v21  ;;  %v1233_v30 = vpack.c.bf16 %v701_v22, %v701_v22  ;;  %v670_v31 = vmax.f32 %v478_v23, 0.0  ;;  %v702_v32 = vmax.f32 %v606_v24, 0.0 }
 0x10c   :  { %992 = vst.msk [vmem:[#allocation2 + $0x58] sm:$0xf] %vm969_vm1, %v1203_v25  ;;  %1024 = vst.msk [vmem:[#allocation2 + $0xd8] sm:$0xf] %vm969_vm1, %v1235_v26  ;;  %v1204_v33 = vpack.c.bf16 %v672_v27, %v672_v27  ;;  %v1236_v35 = vpack.c.bf16 %v704_v28, %v704_v28 }
 0x10d   :  { %990 = vst.msk [vmem:[#allocation2 + $0x50] sm:$0xf] %vm969_vm1, %v1201_v29  ;;  %1022 = vst.msk [vmem:[#allocation2 + $0xd0] sm:$0xf] %vm969_vm1, %v1233_v30  ;;  %v1202_v36 = vpack.c.bf16 %v670_v31, %v670_v31  ;;  %v1234_v37 = vpack.c.bf16 %v702_v32, %v702_v32  ;;  %v1309_v38 = vpop.f32.mrb[24].mxu0  ;;  %v1341_v39 = vpop.f32.mrb[24].mxu1 }
 0x10e   :  { %993 = vst.msk [vmem:[#allocation2 + $0x5c] sm:$0xf] %vm969_vm1, %v1204_v33  ;;  %1025 = vst.msk [vmem:[#allocation2 + $0xdc] sm:$0xf] %vm969_vm1, %v1236_v35  ;;  %v499_v40 = vadd.f32 %v1309_v38, %v1572_v34  ;;  %v627_v41 = vadd.f32 %v1341_v39, %v1572_v34  ;;  %v490_v42 = vpop.f32.mrb[25].mxu0  ;;  %v618_v43 = vpop.f32.mrb[25].mxu1 }
 0x10f   :  { %991 = vst.msk [vmem:[#allocation2 + $0x54] sm:$0xf] %vm969_vm1, %v1202_v36  ;;  %1023 = vst.msk [vmem:[#allocation2 + $0xd4] sm:$0xf] %vm969_vm1, %v1234_v37  ;;  %v491_v44 = vadd.f32 %v1572_v34, %v490_v42  ;;  %v619_v45 = vadd.f32 %v1572_v34, %v618_v43  ;;  %v1310_v46 = vpop.f32.mrb[26].mxu0  ;;  %v1342_v47 = vpop.f32.mrb[26].mxu1 }
 0x110   :  { %v675_v48 = vmax.f32 %v499_v40, 0.0  ;;  %v707_v49 = vmax.f32 %v627_v41, 0.0  ;;  %v502_v50 = vadd.f32 %v1310_v46, %v1572_v34  ;;  %v630_v51 = vadd.f32 %v1342_v47, %v1572_v34  ;;  %v493_v52 = vpop.f32.mrb[27].mxu0  ;;  %v621_v53 = vpop.f32.mrb[27].mxu1 }
 0x111   :  { %v673_v54 = vmax.f32 %v491_v44, 0.0  ;;  %v705_v55 = vmax.f32 %v619_v45, 0.0  ;;  %v494_v56 = vadd.f32 %v1572_v34, %v493_v52  ;;  %v622_v57 = vadd.f32 %v1572_v34, %v621_v53 }
 0x112   :  { %v1207_v58 = vpack.c.bf16 %v675_v48, %v675_v48  ;;  %v1239_v59 = vpack.c.bf16 %v707_v49, %v707_v49  ;;  %v676_v60 = vmax.f32 %v502_v50, 0.0  ;;  %v708_v61 = vmax.f32 %v630_v51, 0.0 }
 0x113   :  { %v1205_v62 = vpack.c.bf16 %v673_v54, %v673_v54  ;;  %v1237_v63 = vpack.c.bf16 %v705_v55, %v705_v55  ;;  %v674_v0 = vmax.f32 %v494_v56, 0.0  ;;  %v706_v1 = vmax.f32 %v622_v57, 0.0 }
 0x114   :  { %996 = vst.msk [vmem:[#allocation2 + $0x68] sm:$0xf] %vm969_vm1, %v1207_v58  ;;  %1028 = vst.msk [vmem:[#allocation2 + $0xe8] sm:$0xf] %vm969_vm1, %v1239_v59  ;;  %v1208_v2 = vpack.c.bf16 %v676_v60, %v676_v60  ;;  %v1240_v3 = vpack.c.bf16 %v708_v61, %v708_v61 }
 0x115   :  { %994 = vst.msk [vmem:[#allocation2 + $0x60] sm:$0xf] %vm969_vm1, %v1205_v62  ;;  %1026 = vst.msk [vmem:[#allocation2 + $0xe0] sm:$0xf] %vm969_vm1, %v1237_v63  ;;  %v1206_v4 = vpack.c.bf16 %v674_v0, %v674_v0  ;;  %v1238_v5 = vpack.c.bf16 %v706_v1, %v706_v1  ;;  %v1313_v6 = vpop.f32.mrb[28].mxu0  ;;  %v1345_v7 = vpop.f32.mrb[28].mxu1 }
 0x116   :  { %997 = vst.msk [vmem:[#allocation2 + $0x6c] sm:$0xf] %vm969_vm1, %v1208_v2  ;;  %1029 = vst.msk [vmem:[#allocation2 + $0xec] sm:$0xf] %vm969_vm1, %v1240_v3  ;;  %v515_v8 = vadd.f32 %v1313_v6, %v1572_v34  ;;  %v643_v9 = vadd.f32 %v1345_v7, %v1572_v34  ;;  %v506_v10 = vpop.f32.mrb[29].mxu0  ;;  %v634_v11 = vpop.f32.mrb[29].mxu1 }
 0x117   :  { %995 = vst.msk [vmem:[#allocation2 + $0x64] sm:$0xf] %vm969_vm1, %v1206_v4  ;;  %1027 = vst.msk [vmem:[#allocation2 + $0xe4] sm:$0xf] %vm969_vm1, %v1238_v5  ;;  %v507_v12 = vadd.f32 %v1572_v34, %v506_v10  ;;  %v635_v13 = vadd.f32 %v1572_v34, %v634_v11  ;;  %v1314_v14 = vpop.f32.mrb[30].mxu0  ;;  %v1346_v15 = vpop.f32.mrb[30].mxu1 }
 0x118   :  { %v679_v16 = vmax.f32 %v515_v8, 0.0  ;;  %v711_v17 = vmax.f32 %v643_v9, 0.0  ;;  %v518_v18 = vadd.f32 %v1314_v14, %v1572_v34  ;;  %v646_v19 = vadd.f32 %v1346_v15, %v1572_v34  ;;  %v509_v20 = vpop.f32.mrb[31].mxu0  ;;  %v637_v21 = vpop.f32.mrb[31].mxu1 }
 0x119   :  { %v677_v22 = vmax.f32 %v507_v12, 0.0  ;;  %v709_v23 = vmax.f32 %v635_v13, 0.0  ;;  %v510_v24 = vadd.f32 %v1572_v34, %v509_v20  ;;  %v638_v25 = vadd.f32 %v1572_v34, %v637_v21 }
 0x11a   :  { %v1211_v26 = vpack.c.bf16 %v679_v16, %v679_v16  ;;  %v1243_v27 = vpack.c.bf16 %v711_v17, %v711_v17  ;;  %v680_v28 = vmax.f32 %v518_v18, 0.0  ;;  %v712_v29 = vmax.f32 %v646_v19, 0.0 }
 0x11b   :  { %v1209_v30 = vpack.c.bf16 %v677_v22, %v677_v22  ;;  %v1241_v31 = vpack.c.bf16 %v709_v23, %v709_v23  ;;  %v678_v32 = vmax.f32 %v510_v24, 0.0  ;;  %v710_v33 = vmax.f32 %v638_v25, 0.0 }
 0x11c   :  { %1000 = vst.msk [vmem:[#allocation2 + $0x78] sm:$0xf] %vm969_vm1, %v1211_v26  ;;  %1032 = vst.msk [vmem:[#allocation2 + $0xf8] sm:$0xf] %vm969_vm1, %v1243_v27  ;;  %v1212_v35 = vpack.c.bf16 %v680_v28, %v680_v28  ;;  %v1244_v36 = vpack.c.bf16 %v712_v29, %v712_v29 }
 0x11d   :  { %998 = vst.msk [vmem:[#allocation2 + $0x70] sm:$0xf] %vm969_vm1, %v1209_v30  ;;  %1030 = vst.msk [vmem:[#allocation2 + $0xf0] sm:$0xf] %vm969_vm1, %v1241_v31  ;;  %v1210_v34 = vpack.c.bf16 %v678_v32, %v678_v32  ;;  %v1242_v37 = vpack.c.bf16 %v710_v33, %v710_v33 }
 0x11e   :  { %1001 = vst.msk [vmem:[#allocation2 + $0x7c] sm:$0xf] %vm969_vm1, %v1212_v35  ;;  %1033 = vst.msk [vmem:[#allocation2 + $0xfc] sm:$0xf] %vm969_vm1, %v1244_v36 }
 0x11f   :  { %999 = vst.msk [vmem:[#allocation2 + $0x74] sm:$0xf] %vm969_vm1, %v1210_v34  ;;  %1031 = vst.msk [vmem:[#allocation2 + $0xf4] sm:$0xf] %vm969_vm1, %v1242_v37 }
 0x120   :  { %1399 = shalt.err (!%p1396_p4)
}
 0x121   :  { %s1400_s28 = scalar_lea.hbm %s1717_s3, 4096 }
 0x122   :  { %p1401_p5 = scmp.ne.s32.totalorder %s1717_s3, %s1400_s28  ;;  %p1404_p6 = scmp.lt.u32.totalorder %s1400_s28, %s1717_s3 }
 0x124   :  { %p1406_p7 = pnand %p1404_p6, %p1401_p5 }
 0x126   :  { %1409 = shalt.err (!%p1406_p7)
}
 0x127   :  { %s1413_s6 = smov 64   ;;  %s1414_s7 = smov 4  }
 0x128   :  { %1045 = dma.vmem_to_hbm [thread:$0]  %s1040_s2, 4096, %s1717_s3, [#allocation3], %s1413_s6, %s1413_s6, %s1414_s7  }
 0x129   :  { %1410 = dma.done.wait [#allocation3], 4096  }
 0x12a   :  { %1411 = vsyncadd [#allocation3], 4294963200 }
 0x12b   :  { %1049 = vsyncpa [#allocation3], 1 }

</bundles_post_ra>
